<compile_context>
chip_gen: v7x
topology: tpu7x:2x2x1
jax: 0.10.0
libtpu: 0.0.40
codegen_flags: <defaults>
</compile_context>

<pallas_src>
import functools

import jax
import jax.numpy as jnp
from jax import lax
from jax.experimental import pallas as pl
from jax.experimental.pallas import tpu as pltpu

LN_EPS = 1e-5


def _round_up(n, m):
    return ((n + m - 1) // m) * m


def residual_kernel(x_ref, w_ref, b_ref, gamma_ref, beta_ref, o_ref,
                    *, inv_d, d_valid, d_padded):
    # x tile (tm, Dp) in its native (MXU) dtype -> fed straight to the MXU.
    x = x_ref[...]

    # sublayer: Linear(D, D). Native-dtype (bf16) operands, f32 accumulation.
    y = jnp.dot(x, w_ref[...], preferred_element_type=jnp.float32)
    y = y + b_ref[...]                                    # bias is f32 (1, Dp)

    if d_padded:
        # Zero the padded feature columns so LN sums only see valid data.
        valid = lax.broadcasted_iota(jnp.int32, y.shape, 1) < d_valid
        y = jnp.where(valid, y, 0.0)

    # LayerNorm over the valid D columns (two-pass variance for accuracy).
    mean = jnp.sum(y, axis=-1, keepdims=True) * inv_d
    diff = y - mean
    if d_padded:
        diff = jnp.where(valid, diff, 0.0)
    var = jnp.sum(diff * diff, axis=-1, keepdims=True) * inv_d
    y_norm = diff * lax.rsqrt(var + LN_EPS)               # EUP rsqrt
    y_norm = y_norm * gamma_ref[...] + beta_ref[...]

    # dropout (eval mode) == identity; residual add in f32.
    o_ref[...] = (x.astype(jnp.float32) + y_norm).astype(o_ref.dtype)


def residual_forward(x, w, b, gamma, beta, *, tm=512):
    """x: [B, S, D]; w: [D, D]; b/gamma/beta: [D]. Returns [B, S, D] (x.dtype)."""
    B, S, D = x.shape
    N = B * S

    # Matmul operands share x's dtype (bf16 recommended -> fast MXU path on
    # v5e/v6e/v7x); LN params stay f32.
    w = w.astype(x.dtype)
    b = b.astype(jnp.float32)
    gamma = gamma.astype(jnp.float32)
    beta = beta.astype(jnp.float32)

    in_bytes = jnp.dtype(x.dtype).itemsize

    # Lane-dense feature axis: pad only when D is not already a lane multiple.
    Dp = _round_up(D, 128)
    d_padded = Dp != D

    # Row tile: as large as requested, but
    #   * aligned to the packed-sublane minimum (16 rows for bf16, 8 for f32),
    #   * no larger than the (aligned) row count,
    #   * no larger than ceil(N/2) so the parallel grid axis has >=2 steps
    #     whenever possible (two TensorCores on v7x).
    row_align = 16 if in_bytes < 4 else 8
    tm_eff = min(tm,
                 _round_up(N, row_align),
                 max(row_align, _round_up(pl.cdiv(N, 2), row_align)))
    grid_rows = pl.cdiv(N, tm_eff)   # ragged tail handled by the boundary block

    x2 = x.reshape(N, D)
    if d_padded:
        x2 = jnp.pad(x2, ((0, 0), (0, Dp - D)))
        w = jnp.pad(w, ((0, Dp - D), (0, Dp - D)))
        b = jnp.pad(b, (0, Dp - D))
        gamma = jnp.pad(gamma, (0, Dp - D))
        beta = jnp.pad(beta, (0, Dp - D))
    b2 = b.reshape(1, Dp)
    g2 = gamma.reshape(1, Dp)
    be2 = beta.reshape(1, Dp)

    # Generation-aware VMEM cap (v7x: 64 MiB/TC, v5e/v6e: 128 MiB).
    try:
        vmem_cap = int(pltpu.get_tpu_info().vmem_capacity_bytes)
    except Exception:
        vmem_cap = 64 << 20
    vmem_cap = int(vmem_cap * 0.8)

    cost = pl.CostEstimate(
        flops=2 * N * Dp * Dp,
        transcendentals=0,
        bytes_accessed=(N * Dp * in_bytes            # x
                        + Dp * Dp * in_bytes         # w
                        + 3 * Dp * 4                 # b / gamma / beta
                        + N * Dp * in_bytes),        # out
    )

    kernel = functools.partial(residual_kernel, inv_d=1.0 / D, d_valid=D,
                               d_padded=d_padded)

    def build(single_buffer_consts):
        if single_buffer_consts:
            def const(shape):
                return pl.BlockSpec(shape, lambda i: (0, 0),
                                    pipeline_mode=pl.Buffered(1))
            const_bufs = 1
        else:
            def const(shape):
                return pl.BlockSpec(shape, lambda i: (0, 0))
            const_bufs = 2

        vmem_needed = (2 * tm_eff * Dp * in_bytes          # x tiles (double-buffered)
                       + 2 * tm_eff * Dp * in_bytes        # out tiles
                       + const_bufs * Dp * Dp * in_bytes   # resident Linear weight
                       + const_bufs * 3 * 8 * Dp * 4)      # bias / gamma / beta rows
        vmem_limit = min(max(int(vmem_needed * 1.25) + (2 << 20), 32 << 20),
                         vmem_cap)

        return pl.pallas_call(
            kernel,
            out_shape=jax.ShapeDtypeStruct((N, Dp), x.dtype),
            grid_spec=pltpu.PrefetchScalarGridSpec(
                num_scalar_prefetch=0,
                grid=(grid_rows,),
                in_specs=[
                    pl.BlockSpec((tm_eff, Dp), lambda i: (i, 0)),  # x rows
                    const((Dp, Dp)),    # Linear weight (resident)
                    const((1, Dp)),     # Linear bias
                    const((1, Dp)),     # LN gamma
                    const((1, Dp)),     # LN beta
                ],
                out_specs=pl.BlockSpec((tm_eff, Dp), lambda i: (i, 0)),
            ),
            compiler_params=pltpu.CompilerParams(
                dimension_semantics=("parallel",),
                vmem_limit_bytes=vmem_limit,
            ),
            cost_estimate=cost,
        )

    try:
        out = build(True)(x2, w, b2, g2, be2)
    except Exception:
        # Fallback if this JAX/Mosaic build rejects pipeline_mode=pl.Buffered(1)
        # on a pallas_call BlockSpec; default double-buffering is still correct.
        out = build(False)(x2, w, b2, g2, be2)

    if d_padded:
        out = out[:, :D]
    return out.reshape(B, S, D)


def reference_forward(x, w, b, gamma, beta):
    # Same precision policy as the kernel: native-dtype matmul operands,
    # f32 accumulation, f32 LayerNorm / residual, output in x.dtype.
    B, S, D = x.shape
    x2 = x.reshape(B * S, D)
    y = jnp.dot(x2, w.astype(x.dtype), preferred_element_type=jnp.float32)
    y = y + b.astype(jnp.float32)
    mean = jnp.mean(y, axis=-1, keepdims=True)
    var = jnp.mean((y - mean) ** 2, axis=-1, keepdims=True)
    y_norm = (y - mean) / jnp.sqrt(var + LN_EPS)
    y_norm = y_norm * gamma.astype(jnp.float32) + beta.astype(jnp.float32)
    out = x2.astype(jnp.float32) + y_norm
    return out.astype(x.dtype).reshape(B, S, D)


if __name__ == "__main__":
    key = jax.random.PRNGKey(0)
    B, S, D = 2, 8, 128   # batch=2, seq=8, dimension=128 (lane-dense feature axis)

    kx, kw, kb, kg, kbe = jax.random.split(key, 5)
    # Activations / weight in bf16 (native MXU path); LN params in f32.
    x = jax.random.normal(kx, (B, S, D), dtype=jnp.float32).astype(jnp.bfloat16)
    w = (jax.random.normal(kw, (D, D), dtype=jnp.float32)
         * (1.0 / jnp.sqrt(D))).astype(jnp.bfloat16)
    b = jax.random.normal(kb, (D,), dtype=jnp.float32) * 0.02
    gamma = 1.0 + 0.05 * jax.random.normal(kg, (D,), dtype=jnp.float32)
    beta = 0.05 * jax.random.normal(kbe, (D,), dtype=jnp.float32)

    out = residual_forward(x, w, b, gamma, beta)
    out = jax.block_until_ready(out)

    ref = reference_forward(x, w, b, gamma, beta)
    assert out.shape == ref.shape and out.dtype == ref.dtype
    assert jnp.allclose(out.astype(jnp.float32), ref.astype(jnp.float32),
                        atol=2e-2, rtol=2e-2), "mismatch vs reference"

    print("KERNEL_OK")
</pallas_src>

<mosaic_0001>
module attributes {stable_mosaic.version = 11 : i64} {
  func.func @residual_kernel(%arg0: i32, %arg1: memref<16x128xbf16, #tpu.memory_space<vmem>>, %arg2: memref<128x128xbf16, #tpu.memory_space<vmem>>, %arg3: memref<1x128xf32, #tpu.memory_space<vmem>>, %arg4: memref<1x128xf32, #tpu.memory_space<vmem>>, %arg5: memref<1x128xf32, #tpu.memory_space<vmem>>, %arg6: memref<16x128xbf16, #tpu.memory_space<vmem>>) attributes {dimension_semantics = [#tpu.dimension_semantics<parallel>], iteration_bounds = array<i64: 1>, scalar_prefetch = 0 : i64, scratch_operands = 0 : i64, tpu.core_type = #tpu.core_type<tc>, window_params = [{transform_indices = @transform_0, window_bounds = array<i64: 16, 128>}, {pipeline_mode = #tpu.pipeline_mode<synchronous>, transform_indices = @transform_1, window_bounds = array<i64: 128, 128>}, {pipeline_mode = #tpu.pipeline_mode<synchronous>, transform_indices = @transform_2, window_bounds = array<i64: 1, 128>}, {pipeline_mode = #tpu.pipeline_mode<synchronous>, transform_indices = @transform_3, window_bounds = array<i64: 1, 128>}, {pipeline_mode = #tpu.pipeline_mode<synchronous>, transform_indices = @transform_4, window_bounds = array<i64: 1, 128>}, {transform_indices = @transform_5, window_bounds = array<i64: 16, 128>}]} {
    %c0 = arith.constant 0 : index
    %c0_0 = arith.constant 0 : index
    %0 = vector.load %arg1[%c0, %c0_0] : memref<16x128xbf16, #tpu.memory_space<vmem>>, vector<16x128xbf16>
    %c0_1 = arith.constant 0 : index
    %c0_2 = arith.constant 0 : index
    %1 = vector.load %arg2[%c0_1, %c0_2] : memref<128x128xbf16, #tpu.memory_space<vmem>>, vector<128x128xbf16>
    %cst = arith.constant dense<0.000000e+00> : vector<16x128xf32>
    %2 = tpu.matmul %0, %1, %cst {dimension_numbers = #tpu.dot_dimension_numbers<[1], [0], [0], [1], [0, 0, 1, 1], [], []>} : vector<16x128xbf16>, vector<128x128xbf16>, vector<16x128xf32> -> vector<16x128xf32>
    %c0_3 = arith.constant 0 : index
    %c0_4 = arith.constant 0 : index
    %3 = vector.load %arg3[%c0_3, %c0_4] : memref<1x128xf32, #tpu.memory_space<vmem>>, vector<1x128xf32>
    %4 = vector.broadcast %3 : vector<1x128xf32> to vector<16x128xf32>
    %5 = arith.addf %2, %4 : vector<16x128xf32>
    %cst_5 = arith.constant dense<0.000000e+00> : vector<16xf32>
    %6 = vector.multi_reduction <add>, %5, %cst_5 [1] : vector<16x128xf32> to vector<16xf32>
    %7 = vector.shape_cast %6 : vector<16xf32> to vector<16x1xf32>
    %cst_6 = arith.constant 7.812500e-03 : f32
    %8 = vector.broadcast %cst_6 : f32 to vector<16x1xf32>
    %9 = arith.mulf %7, %8 : vector<16x1xf32>
    %10 = vector.broadcast %9 : vector<16x1xf32> to vector<16x128xf32>
    %11 = arith.subf %5, %10 : vector<16x128xf32>
    %12 = arith.mulf %11, %11 : vector<16x128xf32>
    %cst_7 = arith.constant dense<0.000000e+00> : vector<16xf32>
    %13 = vector.multi_reduction <add>, %12, %cst_7 [1] : vector<16x128xf32> to vector<16xf32>
    %14 = vector.shape_cast %13 : vector<16xf32> to vector<16x1xf32>
    %cst_8 = arith.constant 7.812500e-03 : f32
    %15 = vector.broadcast %cst_8 : f32 to vector<16x1xf32>
    %16 = arith.mulf %14, %15 : vector<16x1xf32>
    %cst_9 = arith.constant 9.99999974E-6 : f32
    %17 = vector.broadcast %cst_9 : f32 to vector<16x1xf32>
    %18 = arith.addf %16, %17 : vector<16x1xf32>
    %19 = math.rsqrt %18 : vector<16x1xf32>
    %20 = vector.broadcast %19 : vector<16x1xf32> to vector<16x128xf32>
    %21 = arith.mulf %11, %20 : vector<16x128xf32>
    %c0_10 = arith.constant 0 : index
    %c0_11 = arith.constant 0 : index
    %22 = vector.load %arg4[%c0_10, %c0_11] : memref<1x128xf32, #tpu.memory_space<vmem>>, vector<1x128xf32>
    %23 = vector.broadcast %22 : vector<1x128xf32> to vector<16x128xf32>
    %24 = arith.mulf %21, %23 : vector<16x128xf32>
    %c0_12 = arith.constant 0 : index
    %c0_13 = arith.constant 0 : index
    %25 = vector.load %arg5[%c0_12, %c0_13] : memref<1x128xf32, #tpu.memory_space<vmem>>, vector<1x128xf32>
    %26 = vector.broadcast %25 : vector<1x128xf32> to vector<16x128xf32>
    %27 = arith.addf %24, %26 : vector<16x128xf32>
    %28 = arith.extf %0 : vector<16x128xbf16> to vector<16x128xf32>
    %29 = arith.addf %28, %27 : vector<16x128xf32>
    %30 = arith.truncf %29 : vector<16x128xf32> to vector<16x128xbf16>
    %c0_14 = arith.constant 0 : index
    %c0_15 = arith.constant 0 : index
    %31 = vector.load %arg6[%c0_14, %c0_15] : memref<16x128xbf16, #tpu.memory_space<vmem>>, vector<16x128xbf16>
    tpu.vector_store %arg6[%c0_14, %c0_15], %30 {strides = array<i32>} : memref<16x128xbf16, #tpu.memory_space<vmem>>, vector<16x128xbf16>,
    return
  }
  func.func @transform_0(%arg0: i32) -> (i32, i32) {
    %c0_i32 = arith.constant 0 : i32
    %c0_i32_0 = arith.constant 0 : i32
    return %arg0, %c0_i32 : i32, i32
  }
  func.func @transform_1(%arg0: i32) -> (i32, i32) {
    %c0_i32 = arith.constant 0 : i32
    %c0_i32_0 = arith.constant 0 : i32
    %c0_i32_1 = arith.constant 0 : i32
    return %c0_i32, %c0_i32_0 : i32, i32
  }
  func.func @transform_2(%arg0: i32) -> (i32, i32) {
    %c0_i32 = arith.constant 0 : i32
    %c0_i32_0 = arith.constant 0 : i32
    %c0_i32_1 = arith.constant 0 : i32
    return %c0_i32, %c0_i32_0 : i32, i32
  }
  func.func @transform_3(%arg0: i32) -> (i32, i32) {
    %c0_i32 = arith.constant 0 : i32
    %c0_i32_0 = arith.constant 0 : i32
    %c0_i32_1 = arith.constant 0 : i32
    return %c0_i32, %c0_i32_0 : i32, i32
  }
  func.func @transform_4(%arg0: i32) -> (i32, i32) {
    %c0_i32 = arith.constant 0 : i32
    %c0_i32_0 = arith.constant 0 : i32
    %c0_i32_1 = arith.constant 0 : i32
    return %c0_i32, %c0_i32_0 : i32, i32
  }
  func.func @transform_5(%arg0: i32) -> (i32, i32) {
    %c0_i32 = arith.constant 0 : i32
    %c0_i32_0 = arith.constant 0 : i32
    return %arg0, %c0_i32 : i32, i32
  }
}

module attributes {stable_mosaic.version = 11 : i64} {
  func.func @residual_kernel(%arg0: i32, %arg1: memref<16x128xbf16, #tpu.memory_space<vmem>>, %arg2: memref<128x128xbf16, #tpu.memory_space<vmem>>, %arg3: memref<1x128xf32, #tpu.memory_space<vmem>>, %arg4: memref<1x128xf32, #tpu.memory_space<vmem>>, %arg5: memref<1x128xf32, #tpu.memory_space<vmem>>, %arg6: memref<16x128xbf16, #tpu.memory_space<vmem>>) attributes {dimension_semantics = [#tpu.dimension_semantics<parallel>], iteration_bounds = array<i64: 1>, scalar_prefetch = 0 : i64, scratch_operands = 0 : i64, tpu.core_type = #tpu.core_type<tc>, window_params = [{transform_indices = @transform_0, window_bounds = array<i64: 16, 128>}, {pipeline_mode = #tpu.pipeline_mode<synchronous>, transform_indices = @transform_1, window_bounds = array<i64: 128, 128>}, {pipeline_mode = #tpu.pipeline_mode<synchronous>, transform_indices = @transform_2, window_bounds = array<i64: 1, 128>}, {pipeline_mode = #tpu.pipeline_mode<synchronous>, transform_indices = @transform_3, window_bounds = array<i64: 1, 128>}, {pipeline_mode = #tpu.pipeline_mode<synchronous>, transform_indices = @transform_4, window_bounds = array<i64: 1, 128>}, {transform_indices = @transform_5, window_bounds = array<i64: 16, 128>}]} {
    %c0 = arith.constant 0 : index
    %c0_0 = arith.constant 0 : index
    %0 = vector.load %arg1[%c0, %c0_0] : memref<16x128xbf16, #tpu.memory_space<vmem>>, vector<16x128xbf16>
    %c0_1 = arith.constant 0 : index
    %c0_2 = arith.constant 0 : index
    %1 = vector.load %arg2[%c0_1, %c0_2] : memref<128x128xbf16, #tpu.memory_space<vmem>>, vector<128x128xbf16>
    %cst = arith.constant dense<0.000000e+00> : vector<16x128xf32>
    %2 = tpu.matmul %0, %1, %cst {dimension_numbers = #tpu.dot_dimension_numbers<[1], [0], [0], [1], [0, 0, 1, 1], [], []>} : vector<16x128xbf16>, vector<128x128xbf16>, vector<16x128xf32> -> vector<16x128xf32>
    %c0_3 = arith.constant 0 : index
    %c0_4 = arith.constant 0 : index
    %3 = vector.load %arg3[%c0_3, %c0_4] : memref<1x128xf32, #tpu.memory_space<vmem>>, vector<1x128xf32>
    %4 = vector.broadcast %3 : vector<1x128xf32> to vector<16x128xf32>
    %5 = arith.addf %2, %4 : vector<16x128xf32>
    %cst_5 = arith.constant dense<0.000000e+00> : vector<16xf32>
    %6 = vector.multi_reduction <add>, %5, %cst_5 [1] : vector<16x128xf32> to vector<16xf32>
    %7 = vector.shape_cast %6 : vector<16xf32> to vector<16x1xf32>
    %cst_6 = arith.constant 7.812500e-03 : f32
    %8 = vector.broadcast %cst_6 : f32 to vector<16x1xf32>
    %9 = arith.mulf %7, %8 : vector<16x1xf32>
    %10 = vector.broadcast %9 : vector<16x1xf32> to vector<16x128xf32>
    %11 = arith.subf %5, %10 : vector<16x128xf32>
    %12 = arith.mulf %11, %11 : vector<16x128xf32>
    %cst_7 = arith.constant dense<0.000000e+00> : vector<16xf32>
    %13 = vector.multi_reduction <add>, %12, %cst_7 [1] : vector<16x128xf32> to vector<16xf32>
    %14 = vector.shape_cast %13 : vector<16xf32> to vector<16x1xf32>
    %cst_8 = arith.constant 7.812500e-03 : f32
    %15 = vector.broadcast %cst_8 : f32 to vector<16x1xf32>
    %16 = arith.mulf %14, %15 : vector<16x1xf32>
    %cst_9 = arith.constant 9.99999974E-6 : f32
    %17 = vector.broadcast %cst_9 : f32 to vector<16x1xf32>
    %18 = arith.addf %16, %17 : vector<16x1xf32>
    %19 = math.rsqrt %18 : vector<16x1xf32>
    %20 = vector.broadcast %19 : vector<16x1xf32> to vector<16x128xf32>
    %21 = arith.mulf %11, %20 : vector<16x128xf32>
    %c0_10 = arith.constant 0 : index
    %c0_11 = arith.constant 0 : index
    %22 = vector.load %arg4[%c0_10, %c0_11] : memref<1x128xf32, #tpu.memory_space<vmem>>, vector<1x128xf32>
    %23 = vector.broadcast %22 : vector<1x128xf32> to vector<16x128xf32>
    %24 = arith.mulf %21, %23 : vector<16x128xf32>
    %c0_12 = arith.constant 0 : index
    %c0_13 = arith.constant 0 : index
    %25 = vector.load %arg5[%c0_12, %c0_13] : memref<1x128xf32, #tpu.memory_space<vmem>>, vector<1x128xf32>
    %26 = vector.broadcast %25 : vector<1x128xf32> to vector<16x128xf32>
    %27 = arith.addf %24, %26 : vector<16x128xf32>
    %28 = arith.extf %0 : vector<16x128xbf16> to vector<16x128xf32>
    %29 = arith.addf %28, %27 : vector<16x128xf32>
    %30 = arith.truncf %29 : vector<16x128xf32> to vector<16x128xbf16>
    %c0_14 = arith.constant 0 : index
    %c0_15 = arith.constant 0 : index
    %31 = vector.load %arg6[%c0_14, %c0_15] : memref<16x128xbf16, #tpu.memory_space<vmem>>, vector<16x128xbf16>
    tpu.vector_store %arg6[%c0_14, %c0_15], %30 {strides = array<i32>} : memref<16x128xbf16, #tpu.memory_space<vmem>>, vector<16x128xbf16>,
    return
  }
  func.func @transform_0(%arg0: i32) -> (i32, i32) {
    %c0_i32 = arith.constant 0 : i32
    %c0_i32_0 = arith.constant 0 : i32
    return %arg0, %c0_i32 : i32, i32
  }
  func.func @transform_1(%arg0: i32) -> (i32, i32) {
    %c0_i32 = arith.constant 0 : i32
    %c0_i32_0 = arith.constant 0 : i32
    %c0_i32_1 = arith.constant 0 : i32
    return %c0_i32, %c0_i32_0 : i32, i32
  }
  func.func @transform_2(%arg0: i32) -> (i32, i32) {
    %c0_i32 = arith.constant 0 : i32
    %c0_i32_0 = arith.constant 0 : i32
    %c0_i32_1 = arith.constant 0 : i32
    return %c0_i32, %c0_i32_0 : i32, i32
  }
  func.func @transform_3(%arg0: i32) -> (i32, i32) {
    %c0_i32 = arith.constant 0 : i32
    %c0_i32_0 = arith.constant 0 : i32
    %c0_i32_1 = arith.constant 0 : i32
    return %c0_i32, %c0_i32_0 : i32, i32
  }
  func.func @transform_4(%arg0: i32) -> (i32, i32) {
    %c0_i32 = arith.constant 0 : i32
    %c0_i32_0 = arith.constant 0 : i32
    %c0_i32_1 = arith.constant 0 : i32
    return %c0_i32, %c0_i32_0 : i32, i32
  }
  func.func @transform_5(%arg0: i32) -> (i32, i32) {
    %c0_i32 = arith.constant 0 : i32
    %c0_i32_0 = arith.constant 0 : i32
    return %arg0, %c0_i32 : i32, i32
  }
}

</mosaic_0001>

<bundles_post_ra>
// kernel: tpu_custom_call.1
= control target key start
LH: loop header
LB: loop body
LE: loop exit
PB: predicated region body
PF: predicated region fallthrough
CT: control target
= control target key end

     0   :  { %10 = vsyncpa [#allocation3], 0  ;;  %s476_s0 = inlined_call_operand.hbm [shape: bf16[16,128], index: 0, kind: input, shape index: {}]   ;;  %s477_s1 = inlined_call_operand.hbm [shape: bf16[128,128], index: 1, kind: input, shape index: {}]   ;;  %s478_s2 = inlined_call_operand.vmem [shape: f32[1,128], index: 2, kind: input, shape index: {}]   ;;  %s479_s3 = inlined_call_operand.vmem [shape: f32[1,128], index: 3, kind: input, shape index: {}]   ;;  %s480_s4 = inlined_call_operand.vmem [shape: f32[1,128], index: 4, kind: input, shape index: {}]   ;;  %s481_s5 = inlined_call_operand.hbm [shape: bf16[16,128], index: 5, kind: output, shape index: {}]  }
   0x1   :  { %11 = vsyncpa [#allocation6], 0 }
   0x2   :  { %12 = vsyncpa [#allocation4], 0  ;;  %s385_s18 = smov [#allocation2]   ;;  %s313_s22 = scalar_lea.hbm %s476_s0, 128 }
   0x3   :  { %s18_s19 = sshll.u32 %s385_s18, 4  ;;  %p314_p0 = scmp.ne.s32.totalorder %s476_s0, %s313_s22  ;;  %s19_s19 = int_to_ptr.vmem [resolvable:$true] %s18_s19 }
   0x4   :  { %p317_p1 = scmp.lt.u32.totalorder %s313_s22, %s476_s0 }
   0x6   :  { %p319_p2 = pnand %p317_p1, %p314_p0 }
   0x8   :  { %322 = shalt.err (!%p319_p2)
}
   0x9   :  { %s323_s27 = scalar_lea.vmem %s19_s19, 128  ;;  %p328_p4 = scmp.lt.s32.totalorder %s19_s19, %s19_s19 }
   0xa   :  { %p324_p3 = scmp.ne.s32.totalorder %s19_s19, %s323_s27  ;;  %p329_p5 = scmp.lt.s32.totalorder %s323_s27, %s323_s27 }
   0xc   :  { %p330_p6 = por %p329_p5, %p328_p4 }
   0xe   :  { %p331_p7 = pnand %p330_p6, %p324_p3 }
  0x10   :  { %334 = shalt.err (!%p331_p7)
}
  0x11   :  { %s386_s28 = smov 64   ;;  %s387_s29 = smov 4  }
  0x12   :  { %24 = dma.hbm_to_vmem [thread:$0]  %s476_s0, 128, %s19_s19, [#allocation3], %s386_s28, %s386_s28, %s387_s29  }
  0x13   :  { %s388_s7 = smov [#allocation5]   ;;  %s335_s11 = scalar_lea.hbm %s477_s1, 1024 }
  0x14   :  { %s30_s8 = sshll.u32 %s388_s7, 4  ;;  %p336_p8 = scmp.ne.s32.totalorder %s477_s1, %s335_s11  ;;  %s31_s8 = int_to_ptr.vmem [resolvable:$true] %s30_s8 }
  0x15   :  { %p339_p9 = scmp.lt.u32.totalorder %s335_s11, %s477_s1 }
  0x17   :  { %p341_p10 = pnand %p339_p9, %p336_p8 }
  0x19   :  { %344 = shalt.err (!%p341_p10)
}
  0x1a   :  { %s345_s16 = scalar_lea.vmem %s31_s8, 1024  ;;  %p350_p12 = scmp.lt.s32.totalorder %s31_s8, %s31_s8 }
  0x1b   :  { %p346_p11 = scmp.ne.s32.totalorder %s31_s8, %s345_s16  ;;  %p351_p13 = scmp.lt.s32.totalorder %s345_s16, %s345_s16 }
  0x1d   :  { %p352_p0 = por %p351_p13, %p350_p12 }
  0x1f   :  { %p353_p1 = pnand %p352_p0, %p346_p11 }
  0x21   :  { %356 = shalt.err (!%p353_p1)
}
  0x22   :  { %36 = dma.hbm_to_vmem [thread:$0]  %s477_s1, 1024, %s31_s8, [#allocation6], %s386_s28, %s386_s28, %s387_s29  }
  0x23   :  { %379 = dma.done.wait [#allocation3], 128  }
  0x24   :  { %380 = vsyncadd [#allocation3], 4294967168 }
  0x25   :  { %381 = dma.done.wait [#allocation6], 1024  }
  0x26   :  { %382 = vsyncadd [#allocation6], 4294966272  ;;  %v389_v0 = vmov 0.0   ;;  %vm390_vm0 = vmmov 0   ;;  %v299_v1 = vld [vmem:[#allocation5] sm:$0xff]   ;;  %v300_v2 = vld [vmem:[#allocation5 + $0x8] sm:$0xff]  }
  0x27   :  { %272 = vmatprep.subr.bf16.mxu0 %v389_v0  ;;  %288 = vmatprep.mubr.msk.bf16.mxu0 %vm390_vm0, %v389_v0  ;;  %v301_v3 = vld [vmem:[#allocation5 + $0x10] sm:$0xff]   ;;  %v302_v4 = vld [vmem:[#allocation5 + $0x18] sm:$0xff]   ;;  %v303_v5 = vld [vmem:[#allocation5 + $0x20] sm:$0xff]   ;;  %s391_s22 = smov [#allocation7]  }
  0x28   :  { %273 = vmatpush3.bf16.msra.mxu0 %v299_v1  ;;  %v304_v6 = vld [vmem:[#allocation5 + $0x28] sm:$0xff]   ;;  %v305_v7 = vld [vmem:[#allocation5 + $0x30] sm:$0xff]   ;;  %v306_v8 = vld [vmem:[#allocation5 + $0x38] sm:$0xff]   ;;  %s229_s23 = sshll.u32 %s391_s22, 4  ;;  %s230_s23 = int_to_ptr.vmem [resolvable:$true] %s229_s23 }
  0x29   :  { %274 = vmatprep.subr.bf16.mxu0 %v389_v0  ;;  %v50_v9 = vld [vmem:[#allocation2] sm:$0xff]   ;;  %p362_p3 = scmp.lt.s32.totalorder %s230_s23, %s230_s23 }
  0x2a   :  { %v242_v10 = vld [vmem:[%s478_s2] ss:$0 sm:$0xff]  ;;  %v210_v38 = vunpack.c.l.bf16 %v50_v9  ;;  %v211_v39 = vunpack.c.h.bf16 %v50_v9 }
  0x2b   :  { %v252_v32 = vld [vmem:[%s479_s3] ss:$0 sm:$0xff]  ;;  %s357_s3 = scalar_lea.vmem %s230_s23, 128 }
  0x2c   :  { %275 = vmatpush3.bf16.msra.mxu0 %v300_v2  ;;  %v253_v36 = vld [vmem:[%s480_s4] ss:$0 sm:$0xff]  ;;  %p358_p2 = scmp.ne.s32.totalorder %s230_s23, %s357_s3  ;;  %p363_p4 = scmp.lt.s32.totalorder %s357_s3, %s357_s3 }
  0x2d   :  { %276 = vmatprep.subr.bf16.mxu0 %v389_v0 }
  0x2e   :  { %p364_p5 = por %p363_p4, %p362_p3 }
  0x30   :  { %277 = vmatpush3.bf16.msra.mxu0 %v301_v3  ;;  %p365_p6 = pnand %p364_p5, %p358_p2 }
  0x31   :  { %278 = vmatprep.subr.bf16.mxu0 %v389_v0 }
  0x34   :  { %279 = vmatpush3.bf16.msra.mxu0 %v302_v4 }
  0x35   :  { %280 = vmatprep.subr.bf16.mxu0 %v389_v0 }
  0x38   :  { %281 = vmatpush3.bf16.msra.mxu0 %v303_v5 }
  0x39   :  { %282 = vmatprep.subr.bf16.mxu0 %v389_v0 }
  0x3c   :  { %283 = vmatpush3.bf16.msra.mxu0 %v304_v6 }
  0x3d   :  { %284 = vmatprep.subr.bf16.mxu0 %v389_v0 }
  0x40   :  { %285 = vmatpush3.bf16.msra.mxu0 %v305_v7 }
  0x41   :  { %286 = vmatprep.subr.bf16.mxu0 %v389_v0 }
  0x44   :  { %287 = vmatpush3.bf16.msra.mxu0 %v306_v8 }
  0x47   :  { %289 = vmatmul.mubr.bf16.vlgmr.msra.gmra.mrb[0].mxu0 %v50_v9 }
 0x11a   :  { %v163_v11 = vpop.f32.mrb[0].mxu0 }
 0x11b   :  { %v164_v12 = vadd.f32 %v242_v10, %v163_v11  ;;  %v290_v13 = vpop.f32.mrb[1].mxu0 }
 0x11c   :  { %v166_v14 = vpop.f32.mrb[2].mxu0 }
 0x11d   :  { %170 = vadd.xlane.f32.xlu0 %v164_v12  ;;  %v291_v15 = vpop.f32.mrb[3].mxu0  ;;  %v167_v16 = vadd.f32 %v242_v10, %v166_v14 }
 0x121   :  { %172 = vadd.xlane.f32.xlu0 %v167_v16 }
 0x1aa   :  { %v171_v17 = vpop.xlane.xlu0 %170 }
 0x1ab   :  { %v174_v18 = vmul.f32 0.0078125, %v171_v17 }
 0x1ad   :  { %v176_v19 = vsub.f32 %v164_v12, %v174_v18 }
 0x1ae   :  { %v173_v20 = vpop.xlane.xlu0 %172 }
 0x1af   :  { %v175_v21 = vmul.f32 0.0078125, %v173_v20  ;;  %v178_v22 = vmul.f32 %v176_v19, %v176_v19 }
 0x1b1   :  { %v177_v23 = vsub.f32 %v167_v16, %v175_v21  ;;  %180 = vadd.xlane.f32.xlu1 %v178_v22 }
 0x1b3   :  { %v179_v24 = vmul.f32 %v177_v23, %v177_v23 }
 0x1b5   :  { %182 = vadd.xlane.f32.xlu1 %v179_v24 }
 0x23e   :  { %v181_v25 = vpop.xlane.xlu1 %180 }
 0x23f   :  { %v184_v26 = vmul.f32 0.0078125, %v181_v25 }
 0x241   :  { %v186_v27 = vadd.f32 1e-05, %v184_v26 }
 0x242   :  { %v183_v28 = vpop.xlane.xlu1 %182 }
 0x243   :  { %309 = vrsqrt.f32 %v186_v27  ;;  %v185_v29 = vmul.f32 0.0078125, %v183_v28 }
 0x245   :  { %v187_v30 = vadd.f32 1e-05, %v185_v29 }
 0x247   :  { %311 = vrsqrt.f32 %v187_v30 }
 0x24d   :  { %v310_v31 = vpop.eup %309 }
 0x24e   :  { %v190_v33 = vmul.f32 %v310_v31, %v176_v19 }
 0x250   :  { %v199_v34 = vmul.f32 %v252_v32, %v190_v33 }
 0x251   :  { %v312_v35 = vpop.eup %311 }
 0x252   :  { %v191_v37 = vmul.f32 %v312_v35, %v177_v23  ;;  %v208_v41 = vadd.f32 %v253_v36, %v199_v34 }
 0x254   :  { %v200_v40 = vmul.f32 %v252_v32, %v191_v37  ;;  %v212_v43 = vadd.f32 %v210_v38, %v208_v41 }
 0x256   :  { %v209_v42 = vadd.f32 %v253_v36, %v200_v40 }
 0x258   :  { %v213_v44 = vadd.f32 %v211_v39, %v209_v42 }
 0x25a   :  { %v261_v45 = vpack.c.bf16 %v213_v44, %v212_v43 }
 0x25c   :  { %262 = vst [vmem:[#allocation7] sm:$0xff] %v261_v45  }
 0x25d   :  { %368 = shalt.err (!%p365_p6)
}
 0x25e   :  { %s369_s25 = scalar_lea.hbm %s481_s5, 128 }
 0x25f   :  { %p370_p7 = scmp.ne.s32.totalorder %s481_s5, %s369_s25  ;;  %p373_p8 = scmp.lt.u32.totalorder %s369_s25, %s481_s5 }
 0x261   :  { %p375_p9 = pnand %p373_p8, %p370_p7 }
 0x263   :  { %378 = shalt.err (!%p375_p9)
}
 0x264   :  { %235 = dma.vmem_to_hbm [thread:$0]  %s230_s23, 128, %s481_s5, [#allocation4], %s386_s28, %s386_s28, %s387_s29  }
 0x265   :  { %383 = dma.done.wait [#allocation4], 128  }
 0x266   :  { %384 = vsyncadd [#allocation4], 4294967168 }
 0x267   :  { %239 = vsyncpa [#allocation3], 1 }
 0x268   :  { %240 = vsyncpa [#allocation6], 1 }
 0x269   :  { %241 = vsyncpa [#allocation4], 1 }

// kernel: tpu_custom_call.1
= control target key start
LH: loop header
LB: loop body
LE: loop exit
PB: predicated region body
PF: predicated region fallthrough
CT: control target
= control target key end

     0   :  { %10 = vsyncpa [#allocation3], 0  ;;  %s476_s0 = inlined_call_operand.hbm [shape: bf16[16,128], index: 0, kind: input, shape index: {}]   ;;  %s477_s1 = inlined_call_operand.hbm [shape: bf16[128,128], index: 1, kind: input, shape index: {}]   ;;  %s478_s2 = inlined_call_operand.vmem [shape: f32[1,128], index: 2, kind: input, shape index: {}]   ;;  %s479_s3 = inlined_call_operand.vmem [shape: f32[1,128], index: 3, kind: input, shape index: {}]   ;;  %s480_s4 = inlined_call_operand.vmem [shape: f32[1,128], index: 4, kind: input, shape index: {}]   ;;  %s481_s5 = inlined_call_operand.hbm [shape: bf16[16,128], index: 5, kind: output, shape index: {}]  }
   0x1   :  { %11 = vsyncpa [#allocation6], 0 }
   0x2   :  { %12 = vsyncpa [#allocation4], 0  ;;  %s385_s18 = smov [#allocation2]   ;;  %s313_s22 = scalar_lea.hbm %s476_s0, 128 }
   0x3   :  { %s18_s19 = sshll.u32 %s385_s18, 4  ;;  %p314_p0 = scmp.ne.s32.totalorder %s476_s0, %s313_s22  ;;  %s19_s19 = int_to_ptr.vmem [resolvable:$true] %s18_s19 }
   0x4   :  { %p317_p1 = scmp.lt.u32.totalorder %s313_s22, %s476_s0 }
   0x6   :  { %p319_p2 = pnand %p317_p1, %p314_p0 }
   0x8   :  { %322 = shalt.err (!%p319_p2)
}
   0x9   :  { %s323_s27 = scalar_lea.vmem %s19_s19, 128  ;;  %p328_p4 = scmp.lt.s32.totalorder %s19_s19, %s19_s19 }
   0xa   :  { %p324_p3 = scmp.ne.s32.totalorder %s19_s19, %s323_s27  ;;  %p329_p5 = scmp.lt.s32.totalorder %s323_s27, %s323_s27 }
   0xc   :  { %p330_p6 = por %p329_p5, %p328_p4 }
   0xe   :  { %p331_p7 = pnand %p330_p6, %p324_p3 }
  0x10   :  { %334 = shalt.err (!%p331_p7)
}
  0x11   :  { %s386_s28 = smov 64   ;;  %s387_s29 = smov 4  }
  0x12   :  { %24 = dma.hbm_to_vmem [thread:$0]  %s476_s0, 128, %s19_s19, [#allocation3], %s386_s28, %s386_s28, %s387_s29  }
  0x13   :  { %s388_s7 = smov [#allocation5]   ;;  %s335_s11 = scalar_lea.hbm %s477_s1, 1024 }
  0x14   :  { %s30_s8 = sshll.u32 %s388_s7, 4  ;;  %p336_p8 = scmp.ne.s32.totalorder %s477_s1, %s335_s11  ;;  %s31_s8 = int_to_ptr.vmem [resolvable:$true] %s30_s8 }
  0x15   :  { %p339_p9 = scmp.lt.u32.totalorder %s335_s11, %s477_s1 }
  0x17   :  { %p341_p10 = pnand %p339_p9, %p336_p8 }
  0x19   :  { %344 = shalt.err (!%p341_p10)
}
  0x1a   :  { %s345_s16 = scalar_lea.vmem %s31_s8, 1024  ;;  %p350_p12 = scmp.lt.s32.totalorder %s31_s8, %s31_s8 }
  0x1b   :  { %p346_p11 = scmp.ne.s32.totalorder %s31_s8, %s345_s16  ;;  %p351_p13 = scmp.lt.s32.totalorder %s345_s16, %s345_s16 }
  0x1d   :  { %p352_p0 = por %p351_p13, %p350_p12 }
  0x1f   :  { %p353_p1 = pnand %p352_p0, %p346_p11 }
  0x21   :  { %356 = shalt.err (!%p353_p1)
}
  0x22   :  { %36 = dma.hbm_to_vmem [thread:$0]  %s477_s1, 1024, %s31_s8, [#allocation6], %s386_s28, %s386_s28, %s387_s29  }
  0x23   :  { %379 = dma.done.wait [#allocation3], 128  }
  0x24   :  { %380 = vsyncadd [#allocation3], 4294967168 }
  0x25   :  { %381 = dma.done.wait [#allocation6], 1024  }
  0x26   :  { %382 = vsyncadd [#allocation6], 4294966272  ;;  %v389_v0 = vmov 0.0   ;;  %vm390_vm0 = vmmov 0   ;;  %v299_v1 = vld [vmem:[#allocation5] sm:$0xff]   ;;  %v300_v2 = vld [vmem:[#allocation5 + $0x8] sm:$0xff]  }
  0x27   :  { %272 = vmatprep.subr.bf16.mxu0 %v389_v0  ;;  %288 = vmatprep.mubr.msk.bf16.mxu0 %vm390_vm0, %v389_v0  ;;  %v301_v3 = vld [vmem:[#allocation5 + $0x10] sm:$0xff]   ;;  %v302_v4 = vld [vmem:[#allocation5 + $0x18] sm:$0xff]   ;;  %v303_v5 = vld [vmem:[#allocation5 + $0x20] sm:$0xff]   ;;  %s391_s22 = smov [#allocation7]  }
  0x28   :  { %273 = vmatpush3.bf16.msra.mxu0 %v299_v1  ;;  %v304_v6 = vld [vmem:[#allocation5 + $0x28] sm:$0xff]   ;;  %v305_v7 = vld [vmem:[#allocation5 + $0x30] sm:$0xff]   ;;  %v306_v8 = vld [vmem:[#allocation5 + $0x38] sm:$0xff]   ;;  %s229_s23 = sshll.u32 %s391_s22, 4  ;;  %s230_s23 = int_to_ptr.vmem [resolvable:$true] %s229_s23 }
  0x29   :  { %274 = vmatprep.subr.bf16.mxu0 %v389_v0  ;;  %v50_v9 = vld [vmem:[#allocation2] sm:$0xff]   ;;  %p362_p3 = scmp.lt.s32.totalorder %s230_s23, %s230_s23 }
  0x2a   :  { %v242_v10 = vld [vmem:[%s478_s2] ss:$0 sm:$0xff]  ;;  %v210_v38 = vunpack.c.l.bf16 %v50_v9  ;;  %v211_v39 = vunpack.c.h.bf16 %v50_v9 }
  0x2b   :  { %v252_v32 = vld [vmem:[%s479_s3] ss:$0 sm:$0xff]  ;;  %s357_s3 = scalar_lea.vmem %s230_s23, 128 }
  0x2c   :  { %275 = vmatpush3.bf16.msra.mxu0 %v300_v2  ;;  %v253_v36 = vld [vmem:[%s480_s4] ss:$0 sm:$0xff]  ;;  %p358_p2 = scmp.ne.s32.totalorder %s230_s23, %s357_s3  ;;  %p363_p4 = scmp.lt.s32.totalorder %s357_s3, %s357_s3 }
  0x2d   :  { %276 = vmatprep.subr.bf16.mxu0 %v389_v0 }
  0x2e   :  { %p364_p5 = por %p363_p4, %p362_p3 }
  0x30   :  { %277 = vmatpush3.bf16.msra.mxu0 %v301_v3  ;;  %p365_p6 = pnand %p364_p5, %p358_p2 }
  0x31   :  { %278 = vmatprep.subr.bf16.mxu0 %v389_v0 }
  0x34   :  { %279 = vmatpush3.bf16.msra.mxu0 %v302_v4 }
  0x35   :  { %280 = vmatprep.subr.bf16.mxu0 %v389_v0 }
  0x38   :  { %281 = vmatpush3.bf16.msra.mxu0 %v303_v5 }
  0x39   :  { %282 = vmatprep.subr.bf16.mxu0 %v389_v0 }
  0x3c   :  { %283 = vmatpush3.bf16.msra.mxu0 %v304_v6 }
  0x3d   :  { %284 = vmatprep.subr.bf16.mxu0 %v389_v0 }
  0x40   :  { %285 = vmatpush3.bf16.msra.mxu0 %v305_v7 }
  0x41   :  { %286 = vmatprep.subr.bf16.mxu0 %v389_v0 }
  0x44   :  { %287 = vmatpush3.bf16.msra.mxu0 %v306_v8 }
  0x47   :  { %289 = vmatmul.mubr.bf16.vlgmr.msra.gmra.mrb[0].mxu0 %v50_v9 }
 0x11a   :  { %v163_v11 = vpop.f32.mrb[0].mxu0 }
 0x11b   :  { %v164_v12 = vadd.f32 %v242_v10, %v163_v11  ;;  %v290_v13 = vpop.f32.mrb[1].mxu0 }
 0x11c   :  { %v166_v14 = vpop.f32.mrb[2].mxu0 }
 0x11d   :  { %170 = vadd.xlane.f32.xlu0 %v164_v12  ;;  %v291_v15 = vpop.f32.mrb[3].mxu0  ;;  %v167_v16 = vadd.f32 %v242_v10, %v166_v14 }
 0x121   :  { %172 = vadd.xlane.f32.xlu0 %v167_v16 }
 0x1aa   :  { %v171_v17 = vpop.xlane.xlu0 %170 }
 0x1ab   :  { %v174_v18 = vmul.f32 0.0078125, %v171_v17 }
 0x1ad   :  { %v176_v19 = vsub.f32 %v164_v12, %v174_v18 }
 0x1ae   :  { %v173_v20 = vpop.xlane.xlu0 %172 }
 0x1af   :  { %v175_v21 = vmul.f32 0.0078125, %v173_v20  ;;  %v178_v22 = vmul.f32 %v176_v19, %v176_v19 }
 0x1b1   :  { %v177_v23 = vsub.f32 %v167_v16, %v175_v21  ;;  %180 = vadd.xlane.f32.xlu1 %v178_v22 }
 0x1b3   :  { %v179_v24 = vmul.f32 %v177_v23, %v177_v23 }
 0x1b5   :  { %182 = vadd.xlane.f32.xlu1 %v179_v24 }
 0x23e   :  { %v181_v25 = vpop.xlane.xlu1 %180 }
 0x23f   :  { %v184_v26 = vmul.f32 0.0078125, %v181_v25 }
 0x241   :  { %v186_v27 = vadd.f32 1e-05, %v184_v26 }
 0x242   :  { %v183_v28 = vpop.xlane.xlu1 %182 }
 0x243   :  { %309 = vrsqrt.f32 %v186_v27  ;;  %v185_v29 = vmul.f32 0.0078125, %v183_v28 }
 0x245   :  { %v187_v30 = vadd.f32 1e-05, %v185_v29 }
 0x247   :  { %311 = vrsqrt.f32 %v187_v30 }
 0x24d   :  { %v310_v31 = vpop.eup %309 }
 0x24e   :  { %v190_v33 = vmul.f32 %v310_v31, %v176_v19 }
 0x250   :  { %v199_v34 = vmul.f32 %v252_v32, %v190_v33 }
 0x251   :  { %v312_v35 = vpop.eup %311 }
 0x252   :  { %v191_v37 = vmul.f32 %v312_v35, %v177_v23  ;;  %v208_v41 = vadd.f32 %v253_v36, %v199_v34 }
 0x254   :  { %v200_v40 = vmul.f32 %v252_v32, %v191_v37  ;;  %v212_v43 = vadd.f32 %v210_v38, %v208_v41 }
 0x256   :  { %v209_v42 = vadd.f32 %v253_v36, %v200_v40 }
 0x258   :  { %v213_v44 = vadd.f32 %v211_v39, %v209_v42 }
 0x25a   :  { %v261_v45 = vpack.c.bf16 %v213_v44, %v212_v43 }
 0x25c   :  { %262 = vst [vmem:[#allocation7] sm:$0xff] %v261_v45  }
 0x25d   :  { %368 = shalt.err (!%p365_p6)
}
 0x25e   :  { %s369_s25 = scalar_lea.hbm %s481_s5, 128 }
 0x25f   :  { %p370_p7 = scmp.ne.s32.totalorder %s481_s5, %s369_s25  ;;  %p373_p8 = scmp.lt.u32.totalorder %s369_s25, %s481_s5 }
 0x261   :  { %p375_p9 = pnand %p373_p8, %p370_p7 }
 0x263   :  { %378 = shalt.err (!%p375_p9)
}
 0x264   :  { %235 = dma.vmem_to_hbm [thread:$0]  %s230_s23, 128, %s481_s5, [#allocation4], %s386_s28, %s386_s28, %s387_s29  }
 0x265   :  { %383 = dma.done.wait [#allocation4], 128  }
 0x266   :  { %384 = vsyncadd [#allocation4], 4294967168 }
 0x267   :  { %239 = vsyncpa [#allocation3], 1 }
 0x268   :  { %240 = vsyncpa [#allocation6], 1 }
 0x269   :  { %241 = vsyncpa [#allocation4], 1 }

</bundles_post_ra>
